<compile_context>
chip_gen: v5e
topology: v5e:2x2
jax: 0.10.0
libtpu: 0.0.40
codegen_flags: <defaults>
</compile_context>

<pallas_src>
import jax
import jax.numpy as jnp
from jax.experimental import pallas as pl
from jax.experimental.pallas import tpu as pltpu

LN_EPS = 1e-5


def _round_up(a, b):
    return (a + b - 1) // b * b


def _swiglu_resnet_kernel(x_ref, lnw_ref, lnb_ref,
                          w1v_ref, w1g_ref, b1v_ref, b1g_ref,
                          w2_ref, b2_ref, o_ref):
    # --- LayerNorm over last dim: fused single-pass stats (sum, sum-of-sq) ---
    x = x_ref[...].astype(jnp.float32)                         # (TM, d_in)
    mean = jnp.mean(x, axis=-1, keepdims=True)
    meansq = jnp.mean(x * x, axis=-1, keepdims=True)
    var = jnp.maximum(meansq - mean * mean, 0.0)               # population variance
    inv = jax.lax.rsqrt(var + LN_EPS)                          # EUP path
    xn = (x - mean) * inv
    xn = xn * lnw_ref[...].astype(jnp.float32) + lnb_ref[...].astype(jnp.float32)

    # Dropout(p=0.0) is the identity.

    # Feed the MXU in the weights' native dtype; accumulate in f32.
    cdt = w1v_ref.dtype
    xn_c = xn.astype(cdt)

    # --- Linear1, split into value / gate halves (lane-aligned dots) ---
    val = jnp.dot(xn_c, w1v_ref[...],
                  preferred_element_type=jnp.float32) + b1v_ref[...].astype(jnp.float32)
    gate = jnp.dot(xn_c, w1g_ref[...],
                   preferred_element_type=jnp.float32) + b1g_ref[...].astype(jnp.float32)

    # --- SwiGLU: silu(gate) * value ---
    act = (gate * jax.nn.sigmoid(gate)) * val                  # (TM, d_out), f32

    # --- Linear2 ---
    y = jnp.dot(act.astype(cdt), w2_ref[...],
                preferred_element_type=jnp.float32) + b2_ref[...].astype(jnp.float32)

    # --- residual: re-read x_ref just before the store (short f32 live range) ---
    o_ref[...] = (y + x_ref[...].astype(jnp.float32)).astype(o_ref.dtype)


def _vmem_limit_bytes():
    """~80% of physical per-core VMEM; conservative fallback if unknown."""
    try:
        cap = int(getattr(pltpu.get_tpu_info(), "vmem_capacity_bytes", 0))
    except Exception:
        cap = 0
    if cap <= 0:
        return 48 * 1024 * 1024                     # safe on every generation
    return max(16 * 1024 * 1024, int(cap * 0.8))    # ~51 MiB v7x, ~102 MiB v5e/v6e


def swiglu_resnet(x, params, *, tile_m=512):
    """x: (..., d_in) with d_in == d_out. Returns same shape/dtype."""
    lnw, lnb = params["ln_w"], params["ln_b"]
    w1, b1, w2, b2 = params["w1"], params["b1"], params["w2"], params["b2"]

    d_in = x.shape[-1]
    d_out = w2.shape[0]
    assert d_in == d_out, "residual requires d_in == d_out"
    assert w1.shape == (d_in, 2 * d_out)

    orig_shape = x.shape
    xf = x.reshape(-1, d_in)                                    # (N, d_in)
    n = xf.shape[0]

    x_isz = jnp.dtype(x.dtype).itemsize
    w_isz = jnp.dtype(w1.dtype).itemsize
    packing = max(8, 32 // x_isz)        # sublane packing: f32->8, bf16->16, int8/fp8->32

    vmem_limit = _vmem_limit_bytes()

    # Resident parameter footprint (single-buffered thanks to pl.Buffered(1)).
    weight_bytes = ((2 * d_in * d_out + d_out * d_out)
                    + (2 * d_in + 3 * d_out)) * w_isz
    # Per-row cost of an M tile: double-buffered x & out slabs + f32 intermediates.
    per_row = 2 * 2 * d_in * x_isz + (d_in + 3 * d_out) * 4
    avail = max(vmem_limit - weight_bytes - (4 << 20), per_row * packing)
    tm_cap = avail // per_row

    # Adaptive row tile: large when HBM-bound, clamped by VMEM and token count.
    tm = int(min(tile_m, tm_cap, _round_up(n, packing)))
    if tm >= 256:
        tm = tm // 256 * 256         # MXU-friendly (also 128-aligned for v5e)
    elif tm >= 128:
        tm = tm // 128 * 128
    else:
        tm = max(tm // packing * packing, packing)

    grid_m = pl.cdiv(n, tm)          # no jnp.pad: boundary tile is masked by Pallas

    # Split W1/b1 into value & gate halves in the wrapper -> lane-aligned dots.
    w1v, w1g = w1[:, :d_out], w1[:, d_out:]
    b1v = b1[:d_out].reshape(1, d_out)
    b1g = b1[d_out:].reshape(1, d_out)
    lnw2 = lnw.reshape(1, d_in)
    lnb2 = lnb.reshape(1, d_in)
    b2_2 = b2.reshape(1, d_out)

    rep = lambda i: (0, 0)

    def param_spec(shape):
        # Constant-index parameter blocks: fetched once, single-buffered.
        return pl.BlockSpec(shape, rep, pipeline_mode=pl.Buffered(1))

    out = pl.pallas_call(
        _swiglu_resnet_kernel,
        out_shape=jax.ShapeDtypeStruct((n, d_in), x.dtype),
        grid_spec=pltpu.PrefetchScalarGridSpec(
            num_scalar_prefetch=0,
            grid=(grid_m,),
            in_specs=[
                pl.BlockSpec((tm, d_in), lambda i: (i, 0)),   # x rows (double-buffered)
                param_spec((1, d_in)),                        # ln weight
                param_spec((1, d_in)),                        # ln bias
                param_spec((d_in, d_out)),                    # W1 value half
                param_spec((d_in, d_out)),                    # W1 gate half
                param_spec((1, d_out)),                       # b1 value half
                param_spec((1, d_out)),                       # b1 gate half
                param_spec((d_out, d_out)),                   # W2
                param_spec((1, d_out)),                       # b2
            ],
            out_specs=pl.BlockSpec((tm, d_in), lambda i: (i, 0)),
        ),
        compiler_params=pltpu.CompilerParams(
            dimension_semantics=("parallel",),
            vmem_limit_bytes=vmem_limit),
    )(xf, lnw2, lnb2, w1v, w1g, b1v, b1g, w2, b2_2)

    return out.reshape(orig_shape)


def init_params(key, d_in, d_out, dtype=jnp.float32):
    """Deterministic synthetic init matching nn.Module parameter shapes."""
    k1, k2, k3, k4 = jax.random.split(key, 4)
    # nn.Linear(d_in, 2*d_out): weight (2*d_out, d_in) -> stored transposed (d_in, 2*d_out)
    lim1 = 1.0 / jnp.sqrt(d_in)
    w1 = jax.random.uniform(k1, (d_in, 2 * d_out), dtype, -lim1, lim1)
    b1 = jax.random.uniform(k2, (2 * d_out,), dtype, -lim1, lim1)
    # nn.Linear(d_out, d_out): weight (d_out, d_out) -> stored transposed
    lim2 = 1.0 / jnp.sqrt(d_out)
    w2 = jax.random.uniform(k3, (d_out, d_out), dtype, -lim2, lim2)
    b2 = jax.random.uniform(k4, (d_out,), dtype, -lim2, lim2)
    return {
        "ln_w": jnp.ones((d_in,), dtype),   # LayerNorm default init
        "ln_b": jnp.zeros((d_in,), dtype),
        "w1": w1, "b1": b1,
        "w2": w2, "b2": b2,
    }


def reference(x, p):
    """Pure-JAX reference of the PyTorch forward."""
    xf = x.astype(jnp.float32)
    mean = jnp.mean(xf, axis=-1, keepdims=True)
    var = jnp.mean((xf - mean) ** 2, axis=-1, keepdims=True)
    xn = (xf - mean) / jnp.sqrt(var + LN_EPS) * p["ln_w"] + p["ln_b"]
    h = xn @ p["w1"] + p["b1"]
    d_out = p["w2"].shape[0]
    val, gate = h[..., :d_out], h[..., d_out:]
    act = jax.nn.silu(gate) * val
    y = act @ p["w2"] + p["b2"]
    return (y + xf).astype(x.dtype)


if __name__ == "__main__":
    # Small shapes consistent with the module: batch=2, seq=8, hidden=32.
    batch, seq, d = 2, 8, 32   # d_in == d_out == 32
    key = jax.random.PRNGKey(0)
    kx, kp, kx2 = jax.random.split(key, 3)
    x = jax.random.normal(kx, (batch, seq, d), jnp.float32)
    params = init_params(kp, d, d)

    out = swiglu_resnet(x, params)
    out = jax.block_until_ready(out)

    ref = reference(x, params)
    assert out.shape == x.shape and out.dtype == x.dtype
    assert jnp.allclose(out, ref, atol=1e-4, rtol=1e-5), \
        f"max abs err {jnp.max(jnp.abs(out - ref))}"

    # Secondary check: token count not a multiple of the tile
    # (exercises the masked partial boundary tile, no jnp.pad copy).
    x2 = jax.random.normal(kx2, (3, 20, d), jnp.float32)
    out2 = jax.block_until_ready(swiglu_resnet(x2, params))
    ref2 = reference(x2, params)
    assert jnp.allclose(out2, ref2, atol=1e-4, rtol=1e-5), \
        f"max abs err {jnp.max(jnp.abs(out2 - ref2))}"

    print("KERNEL_OK")
</pallas_src>

<mosaic_0001>
module attributes {stable_mosaic.version = 11 : i64} {
  func.func @_swiglu_resnet_kernel(%arg0: i32, %arg1: memref<16x32xf32, #tpu.memory_space<vmem>>, %arg2: memref<1x32xf32, #tpu.memory_space<vmem>>, %arg3: memref<1x32xf32, #tpu.memory_space<vmem>>, %arg4: memref<32x32xf32, #tpu.memory_space<vmem>>, %arg5: memref<32x32xf32, #tpu.memory_space<vmem>>, %arg6: memref<1x32xf32, #tpu.memory_space<vmem>>, %arg7: memref<1x32xf32, #tpu.memory_space<vmem>>, %arg8: memref<32x32xf32, #tpu.memory_space<vmem>>, %arg9: memref<1x32xf32, #tpu.memory_space<vmem>>, %arg10: memref<16x32xf32, #tpu.memory_space<vmem>>) attributes {dimension_semantics = [#tpu.dimension_semantics<parallel>], iteration_bounds = array<i64: 1>, scalar_prefetch = 0 : i64, scratch_operands = 0 : i64, tpu.core_type = #tpu.core_type<tc>, window_params = [{transform_indices = @transform_0, window_bounds = array<i64: 16, 32>}, {pipeline_mode = #tpu.pipeline_mode<synchronous>, transform_indices = @transform_1, window_bounds = array<i64: 1, 32>}, {pipeline_mode = #tpu.pipeline_mode<synchronous>, transform_indices = @transform_2, window_bounds = array<i64: 1, 32>}, {pipeline_mode = #tpu.pipeline_mode<synchronous>, transform_indices = @transform_3, window_bounds = array<i64: 32, 32>}, {pipeline_mode = #tpu.pipeline_mode<synchronous>, transform_indices = @transform_4, window_bounds = array<i64: 32, 32>}, {pipeline_mode = #tpu.pipeline_mode<synchronous>, transform_indices = @transform_5, window_bounds = array<i64: 1, 32>}, {pipeline_mode = #tpu.pipeline_mode<synchronous>, transform_indices = @transform_6, window_bounds = array<i64: 1, 32>}, {pipeline_mode = #tpu.pipeline_mode<synchronous>, transform_indices = @transform_7, window_bounds = array<i64: 32, 32>}, {pipeline_mode = #tpu.pipeline_mode<synchronous>, transform_indices = @transform_8, window_bounds = array<i64: 1, 32>}, {transform_indices = @transform_9, window_bounds = array<i64: 16, 32>}]} {
    %c0 = arith.constant 0 : index
    %c0_0 = arith.constant 0 : index
    %0 = vector.load %arg1[%c0, %c0_0] : memref<16x32xf32, #tpu.memory_space<vmem>>, vector<16x32xf32>
    %cst = arith.constant dense<0.000000e+00> : vector<16xf32>
    %1 = vector.multi_reduction <add>, %0, %cst [1] : vector<16x32xf32> to vector<16xf32>
    %2 = vector.shape_cast %1 : vector<16xf32> to vector<16x1xf32>
    %cst_1 = arith.constant 3.200000e+01 : f32
    %3 = vector.broadcast %cst_1 : f32 to vector<16x1xf32>
    %4 = arith.divf %2, %3 : vector<16x1xf32>
    %5 = arith.mulf %0, %0 : vector<16x32xf32>
    %cst_2 = arith.constant dense<0.000000e+00> : vector<16xf32>
    %6 = vector.multi_reduction <add>, %5, %cst_2 [1] : vector<16x32xf32> to vector<16xf32>
    %7 = vector.shape_cast %6 : vector<16xf32> to vector<16x1xf32>
    %cst_3 = arith.constant 3.200000e+01 : f32
    %8 = vector.broadcast %cst_3 : f32 to vector<16x1xf32>
    %9 = arith.divf %7, %8 : vector<16x1xf32>
    %10 = arith.mulf %4, %4 : vector<16x1xf32>
    %11 = arith.subf %9, %10 : vector<16x1xf32>
    %cst_4 = arith.constant 0.000000e+00 : f32
    %12 = vector.broadcast %cst_4 : f32 to vector<16x1xf32>
    %13 = arith.maximumf %11, %12 : vector<16x1xf32>
    %cst_5 = arith.constant 9.99999974E-6 : f32
    %14 = vector.broadcast %cst_5 : f32 to vector<16x1xf32>
    %15 = arith.addf %13, %14 : vector<16x1xf32>
    %16 = math.rsqrt %15 : vector<16x1xf32>
    %17 = vector.broadcast %4 : vector<16x1xf32> to vector<16x32xf32>
    %18 = arith.subf %0, %17 : vector<16x32xf32>
    %19 = vector.broadcast %16 : vector<16x1xf32> to vector<16x32xf32>
    %20 = arith.mulf %18, %19 : vector<16x32xf32>
    %c0_6 = arith.constant 0 : index
    %c0_7 = arith.constant 0 : index
    %21 = vector.load %arg2[%c0_6, %c0_7] : memref<1x32xf32, #tpu.memory_space<vmem>>, vector<1x32xf32>
    %22 = vector.broadcast %21 : vector<1x32xf32> to vector<16x32xf32>
    %23 = arith.mulf %20, %22 : vector<16x32xf32>
    %c0_8 = arith.constant 0 : index
    %c0_9 = arith.constant 0 : index
    %24 = vector.load %arg3[%c0_8, %c0_9] : memref<1x32xf32, #tpu.memory_space<vmem>>, vector<1x32xf32>
    %25 = vector.broadcast %24 : vector<1x32xf32> to vector<16x32xf32>
    %26 = arith.addf %23, %25 : vector<16x32xf32>
    %c0_10 = arith.constant 0 : index
    %c0_11 = arith.constant 0 : index
    %27 = vector.load %arg4[%c0_10, %c0_11] : memref<32x32xf32, #tpu.memory_space<vmem>>, vector<32x32xf32>
    %cst_12 = arith.constant dense<0.000000e+00> : vector<16x32xf32>
    %28 = tpu.matmul %26, %27, %cst_12 {dimension_numbers = #tpu.dot_dimension_numbers<[1], [0], [0], [1], [0, 0, 1, 1], [], []>} : vector<16x32xf32>, vector<32x32xf32>, vector<16x32xf32> -> vector<16x32xf32>
    %c0_13 = arith.constant 0 : index
    %c0_14 = arith.constant 0 : index
    %29 = vector.load %arg6[%c0_13, %c0_14] : memref<1x32xf32, #tpu.memory_space<vmem>>, vector<1x32xf32>
    %30 = vector.broadcast %29 : vector<1x32xf32> to vector<16x32xf32>
    %31 = arith.addf %28, %30 : vector<16x32xf32>
    %c0_15 = arith.constant 0 : index
    %c0_16 = arith.constant 0 : index
    %32 = vector.load %arg5[%c0_15, %c0_16] : memref<32x32xf32, #tpu.memory_space<vmem>>, vector<32x32xf32>
    %cst_17 = arith.constant dense<0.000000e+00> : vector<16x32xf32>
    %33 = tpu.matmul %26, %32, %cst_17 {dimension_numbers = #tpu.dot_dimension_numbers<[1], [0], [0], [1], [0, 0, 1, 1], [], []>} : vector<16x32xf32>, vector<32x32xf32>, vector<16x32xf32> -> vector<16x32xf32>
    %c0_18 = arith.constant 0 : index
    %c0_19 = arith.constant 0 : index
    %34 = vector.load %arg7[%c0_18, %c0_19] : memref<1x32xf32, #tpu.memory_space<vmem>>, vector<1x32xf32>
    %35 = vector.broadcast %34 : vector<1x32xf32> to vector<16x32xf32>
    %36 = arith.addf %33, %35 : vector<16x32xf32>
    %37 = arith.negf %36 : vector<16x32xf32>
    %38 = math.exp %37 : vector<16x32xf32>
    %cst_20 = arith.constant 1.000000e+00 : f32
    %39 = vector.broadcast %cst_20 : f32 to vector<16x32xf32>
    %40 = arith.addf %39, %38 : vector<16x32xf32>
    %41 = arith.divf %39, %40 : vector<16x32xf32>
    %42 = arith.mulf %36, %41 : vector<16x32xf32>
    %43 = arith.mulf %42, %31 : vector<16x32xf32>
    %c0_21 = arith.constant 0 : index
    %c0_22 = arith.constant 0 : index
    %44 = vector.load %arg8[%c0_21, %c0_22] : memref<32x32xf32, #tpu.memory_space<vmem>>, vector<32x32xf32>
    %cst_23 = arith.constant dense<0.000000e+00> : vector<16x32xf32>
    %45 = tpu.matmul %43, %44, %cst_23 {dimension_numbers = #tpu.dot_dimension_numbers<[1], [0], [0], [1], [0, 0, 1, 1], [], []>} : vector<16x32xf32>, vector<32x32xf32>, vector<16x32xf32> -> vector<16x32xf32>
    %c0_24 = arith.constant 0 : index
    %c0_25 = arith.constant 0 : index
    %46 = vector.load %arg9[%c0_24, %c0_25] : memref<1x32xf32, #tpu.memory_space<vmem>>, vector<1x32xf32>
    %47 = vector.broadcast %46 : vector<1x32xf32> to vector<16x32xf32>
    %48 = arith.addf %45, %47 : vector<16x32xf32>
    %c0_26 = arith.constant 0 : index
    %c0_27 = arith.constant 0 : index
    %49 = vector.load %arg1[%c0_26, %c0_27] : memref<16x32xf32, #tpu.memory_space<vmem>>, vector<16x32xf32>
    %50 = arith.addf %48, %49 : vector<16x32xf32>
    %c0_28 = arith.constant 0 : index
    %c0_29 = arith.constant 0 : index
    %51 = vector.load %arg10[%c0_28, %c0_29] : memref<16x32xf32, #tpu.memory_space<vmem>>, vector<16x32xf32>
    tpu.vector_store %arg10[%c0_28, %c0_29], %50 {strides = array<i32>} : memref<16x32xf32, #tpu.memory_space<vmem>>, vector<16x32xf32>,
    return
  }
  func.func @transform_0(%arg0: i32) -> (i32, i32) {
    %c0_i32 = arith.constant 0 : i32
    %c0_i32_0 = arith.constant 0 : i32
    return %arg0, %c0_i32 : i32, i32
  }
  func.func @transform_1(%arg0: i32) -> (i32, i32) {
    %c0_i32 = arith.constant 0 : i32
    %c0_i32_0 = arith.constant 0 : i32
    %c0_i32_1 = arith.constant 0 : i32
    return %c0_i32, %c0_i32_0 : i32, i32
  }
  func.func @transform_2(%arg0: i32) -> (i32, i32) {
    %c0_i32 = arith.constant 0 : i32
    %c0_i32_0 = arith.constant 0 : i32
    %c0_i32_1 = arith.constant 0 : i32
    return %c0_i32, %c0_i32_0 : i32, i32
  }
  func.func @transform_3(%arg0: i32) -> (i32, i32) {
    %c0_i32 = arith.constant 0 : i32
    %c0_i32_0 = arith.constant 0 : i32
    %c0_i32_1 = arith.constant 0 : i32
    return %c0_i32, %c0_i32_0 : i32, i32
  }
  func.func @transform_4(%arg0: i32) -> (i32, i32) {
    %c0_i32 = arith.constant 0 : i32
    %c0_i32_0 = arith.constant 0 : i32
    %c0_i32_1 = arith.constant 0 : i32
    return %c0_i32, %c0_i32_0 : i32, i32
  }
  func.func @transform_5(%arg0: i32) -> (i32, i32) {
    %c0_i32 = arith.constant 0 : i32
    %c0_i32_0 = arith.constant 0 : i32
    %c0_i32_1 = arith.constant 0 : i32
    return %c0_i32, %c0_i32_0 : i32, i32
  }
  func.func @transform_6(%arg0: i32) -> (i32, i32) {
    %c0_i32 = arith.constant 0 : i32
    %c0_i32_0 = arith.constant 0 : i32
    %c0_i32_1 = arith.constant 0 : i32
    return %c0_i32, %c0_i32_0 : i32, i32
  }
  func.func @transform_7(%arg0: i32) -> (i32, i32) {
    %c0_i32 = arith.constant 0 : i32
    %c0_i32_0 = arith.constant 0 : i32
    %c0_i32_1 = arith.constant 0 : i32
    return %c0_i32, %c0_i32_0 : i32, i32
  }
  func.func @transform_8(%arg0: i32) -> (i32, i32) {
    %c0_i32 = arith.constant 0 : i32
    %c0_i32_0 = arith.constant 0 : i32
    %c0_i32_1 = arith.constant 0 : i32
    return %c0_i32, %c0_i32_0 : i32, i32
  }
  func.func @transform_9(%arg0: i32) -> (i32, i32) {
    %c0_i32 = arith.constant 0 : i32
    %c0_i32_0 = arith.constant 0 : i32
    return %arg0, %c0_i32 : i32, i32
  }
}

</mosaic_0001>

<bundles_post_ra>
// kernel: tpu_custom_call.1
= control target key start
LH: loop header
LB: loop body
LE: loop exit
PB: predicated region body
PF: predicated region fallthrough
CT: control target
= control target key end

     0   :  { %14 = vsyncpa [#allocation3], 0  ;;  %s675_s0 = inlined_call_operand.hbm [shape: f32[16,32], index: 0, kind: input, shape index: {}]   ;;  %s676_s1 = inlined_call_operand.hbm [shape: f32[1,32], index: 1, kind: input, shape index: {}]   ;;  %s677_s2 = inlined_call_operand.vmem [shape: f32[1,32], index: 2, kind: input, shape index: {}]   ;;  %s678_s3 = inlined_call_operand.hbm [shape: f32[32,32], index: 3, kind: input, shape index: {}]   ;;  %s679_s4 = inlined_call_operand.hbm [shape: f32[32,32], index: 4, kind: input, shape index: {}]   ;;  %s680_s5 = inlined_call_operand.vmem [shape: f32[1,32], index: 5, kind: input, shape index: {}]   ;;  %s681_s6 = inlined_call_operand.vmem [shape: f32[1,32], index: 6, kind: input, shape index: {}]   ;;  %s682_s7 = inlined_call_operand.hbm [shape: f32[32,32], index: 7, kind: input, shape index: {}]   ;;  %s683_s8 = inlined_call_operand.vmem [shape: f32[1,32], index: 8, kind: input, shape index: {}]   ;;  %s684_s9 = inlined_call_operand.hbm [shape: f32[16,32], index: 9, kind: output, shape index: {}]  }
   0x1   :  { %15 = vsyncpa [#allocation6], 0 }
   0x2   :  { %16 = vsyncpa [#allocation9], 0  ;;  %s36_s11 = sshll.u32 %s676_s1, 4  ;;  %s37_s11 = int_to_ptr.hbm [resolvable:$true] %s36_s11 }
   0x3   :  { %17 = vsyncpa [#allocation4], 0  ;;  %s545_s12 = smov [#allocation5]   ;;  %s61_s16 = sshll.u32 %s679_s4, 4  ;;  %s62_s16 = int_to_ptr.hbm [resolvable:$true] %s61_s16 }
   0x4   :  { %s38_s13 = sshll.u32 %s545_s12, 4  ;;  %s546_s17 = smov [#allocation8]   ;;  %s39_s13 = int_to_ptr.vmem [resolvable:$true] %s38_s13 }
   0x5   :  { %41 = dma.hbm_to_vmem [thread:$0]  %s37_s11, 16, %s39_s13, [#allocation6]  }
   0x6   :  { %s63_s18 = sshll.u32 %s546_s17, 4  ;;  %s22_s21 = sshll.u32 %s675_s0, 4  ;;  %s64_s18 = int_to_ptr.vmem [resolvable:$true] %s63_s18  ;;  %s23_s21 = int_to_ptr.hbm [resolvable:$true] %s22_s21 }
   0x7   :  { %s547_s1 = smov 128   ;;  %s548_s22 = smov 8  }
   0x8   :  { %69 = dma.hbm_to_vmem [thread:$0]  %s62_s16, 512, %s64_s18, [#allocation9], %s547_s1, %s547_s1, %s548_s22  }
   0x9   :  { %s48_s25 = sshll.u32 %s678_s3, 4  ;;  %s549_s4 = smov [#allocation2]   ;;  %s49_s25 = int_to_ptr.hbm [resolvable:$true] %s48_s25 }
   0xa   :  { %s24_s26 = sshll.u32 %s549_s4, 4  ;;  %s550_s0 = smov [#allocation7]   ;;  %s25_s26 = int_to_ptr.vmem [resolvable:$true] %s24_s26 }
   0xb   :  { %30 = dma.hbm_to_vmem [thread:$0]  %s23_s21, 256, %s25_s26, [#allocation3], %s547_s1, %s547_s1, %s548_s22  }
   0xc   :  { %s50_s27 = sshll.u32 %s550_s0, 4  ;;  %s78_s30 = sshll.u32 %s682_s7, 4  ;;  %s51_s27 = int_to_ptr.vmem [resolvable:$true] %s50_s27  ;;  %s79_s30 = int_to_ptr.hbm [resolvable:$true] %s78_s30 }
   0xd   :  { %56 = dma.hbm_to_vmem [thread:$0]  %s49_s25, 512, %s51_s27, [#allocation6], %s547_s1, %s547_s1, %s548_s22  }
   0xe   :  { %s551_s3 = smov [#allocation10]  }
   0xf   :  { %s80_s10 = sshll.u32 %s551_s3, 4  ;;  %s81_s10 = int_to_ptr.vmem [resolvable:$true] %s80_s10 }
  0x10   :  { %86 = dma.hbm_to_vmem [thread:$0]  %s79_s30, 512, %s81_s10, [#allocation9], %s547_s1, %s547_s1, %s548_s22  }
  0x11   :  { %537 = dma.done.wait [#allocation3], 256  }
  0x12   :  { %538 = vsyncadd [#allocation3], 4294967040 }
  0x13   :  { %539 = dma.done.wait [#allocation6], 528  }
  0x14   :  { %540 = vsyncadd [#allocation6], 4294966768 }
  0x15   :  { %541 = dma.done.wait [#allocation9], 1024  }
  0x16   :  { %542 = vsyncadd [#allocation9], 4294966272  ;;  %vm111_vm0 = vcmask 261120   ;;  %v631_v0 = vld [vmem:[#allocation2 + $0x8] sm:$0xff]  ;;  %v633_v1 = vld [vmem:[#allocation2] sm:$0xff]  ;;  %v552_v8 = vmov 32.0  }
  0x17   :  { %v115_v2 = vsel %vm111_vm0, %v631_v0, 0.0  ;;  %v112_v3 = vsel %vm111_vm0, %v633_v1, 0.0  ;;  %v128_v4 = vmul.f32 %v631_v0, %v631_v0  ;;  %v127_v5 = vmul.f32 %v633_v1, %v633_v1  ;;  %v184_v16 = vld [vmem:[#allocation7 + $0x18] sm:$0xff]  ;;  %v183_v18 = vld [vmem:[#allocation7 + $0x10] sm:$0xff]  ;;  %v182_v22 = vld [vmem:[#allocation7 + $0x8] sm:$0xff]  ;;  %s553_s15 = smov [#allocation11]  }
  0x18   :  { %116 = vadd.xlane.f32.xlu1 %v115_v2  ;;  %113 = vadd.xlane.f32.xlu0 %v112_v3  ;;  %379 = vrcp.f32 %v552_v8  ;;  %v221_v17 = vld [vmem:[#allocation8 + $0x18] sm:$0xff]  ;;  %v220_v20 = vld [vmem:[#allocation8 + $0x10] sm:$0xff]  ;;  %v219_v23 = vld [vmem:[#allocation8 + $0x8] sm:$0xff]  ;;  %s336_s16 = sshll.u32 %s553_s15, 4  ;;  %s338_s19 = sshll.u32 %s684_s9, 4  ;;  %s337_s16 = int_to_ptr.vmem [resolvable:$true] %s336_s16  ;;  %s339_s19 = int_to_ptr.hbm [resolvable:$true] %s338_s19 }
  0x19   :  { %v132_v6 = vsel %vm111_vm0, %v128_v4, 0.0  ;;  %v129_v7 = vsel %vm111_vm0, %v127_v5, 0.0  ;;  %207 = vmatpush.msra.mxu0 %v184_v16  ;;  %361 = vmatpush.msra.mxu3 %v184_v16  ;;  %v181_v25 = vld [vmem:[#allocation7] sm:$0xff]  ;;  %v374_v52 = vld [vmem:[#allocation5] ss:$0 sm:$0xff]  ;;  %v293_v3 = vld [vmem:[#allocation10 + $0x10] sm:$0xff] }
  0x1a   :  { %238 = vmatpush.msra.mxu1 %v221_v17  ;;  %v218_v26 = vld [vmem:[#allocation8] sm:$0xff]  ;;  %v375_v56 = vld [vmem:[%s677_s2] ss:$0 sm:$0xff]  ;;  %v294_v63 = vld [vmem:[#allocation10 + $0x18] sm:$0xff] }
  0x1b   :  { %208 = vmatpush.msra.mxu0 %v183_v18  ;;  %362 = vmatpush.msra.mxu3 %v183_v18  ;;  %v377_v2 = vld [vmem:[%s681_s6] ss:$0 sm:$0xff] }
  0x1c   :  { %239 = vmatpush.msra.mxu1 %v220_v20  ;;  %317 = vmatpush.msra.mxu2 %v294_v63  ;;  %v292_v4 = vld [vmem:[#allocation10 + $0x8] sm:$0xff] }
  0x1d   :  { %209 = vmatpush.msra.mxu0 %v182_v22  ;;  %363 = vmatpush.msra.mxu3 %v182_v22  ;;  %v376_v22 = vld [vmem:[%s680_s5] ss:$0 sm:$0xff] }
  0x1e   :  { %v380_v9 = vpop.eup %379  ;;  %240 = vmatpush.msra.mxu1 %v219_v23  ;;  %318 = vmatpush.msra.mxu2 %v293_v3 }
  0x1f   :  { %v119_v10 = vmul.f32 32.0, %v380_v9  ;;  %vm123_vm1 = vweird.f32 %v380_v9  ;;  %210 = vmatpush.msra.mxu0 %v181_v25  ;;  %364 = vmatpush.msra.mxu3 %v181_v25 }
  0x20   :  { %133 = vadd.xlane.f32.xlu1 %v132_v6  ;;  %130 = vadd.xlane.f32.xlu0 %v129_v7  ;;  %v291_v7 = vld [vmem:[#allocation10] sm:$0xff] }
  0x21   :  { %v120_v11 = vsub.f32 1.0, %v119_v10  ;;  %241 = vmatpush.msra.mxu1 %v218_v26  ;;  %319 = vmatpush.msra.mxu2 %v292_v4 }
  0x23   :  { %v121_v12 = vmul.f32 %v380_v9, %v120_v11  ;;  %320 = vmatpush.msra.mxu2 %v291_v7 }
  0x25   :  { %v122_v13 = vadd.f32 %v380_v9, %v121_v12 }
  0x27   :  { %v124_v19 = vsel %vm123_vm1, %v380_v9, %v122_v13 }
  0x8b   :  { %v117_v14 = vpop.xlane.xlu1 %116  ;;  %v114_v15 = vpop.xlane.xlu0 %113 }
  0x8c   :  { %v126_v21 = vmul.f32 %v124_v19, %v117_v14  ;;  %v125_v24 = vmul.f32 %v124_v19, %v114_v15 }
  0x8e   :  { %v138_v27 = vmul.f32 %v126_v21, %v126_v21  ;;  %v137_v30 = vmul.f32 %v125_v24, %v125_v24  ;;  %v166_v50 = vsub.f32 %v631_v0, %v126_v21  ;;  %v165_v53 = vsub.f32 %v633_v1, %v125_v24 }
  0x93   :  { %v134_v28 = vpop.xlane.xlu1 %133  ;;  %v131_v29 = vpop.xlane.xlu0 %130 }
  0x94   :  { %v136_v31 = vmul.f32 %v134_v28, %v124_v19  ;;  %v135_v32 = vmul.f32 %v131_v29, %v124_v19 }
  0x96   :  { %v140_v33 = vsub.f32 %v136_v31, %v138_v27  ;;  %v139_v34 = vsub.f32 %v135_v32, %v137_v30 }
  0x98   :  { %v142_v35 = vmax.f32 %v140_v33, 0.0  ;;  %v141_v36 = vmax.f32 %v139_v34, 0.0 }
  0x9a   :  { %v144_v37 = vadd.f32 1e-05, %v142_v35  ;;  %v143_v38 = vadd.f32 1e-05, %v141_v36 }
  0x9c   :  { %381 = vrsqrt.f32 %v144_v37  ;;  %vm161_vm4 = vweird.f32 %v144_v37  ;;  %vm151_vm6 = vweird.f32 %v143_v38 }
  0x9d   :  { %383 = vrsqrt.f32 %v143_v38 }
  0xa2   :  { %v382_v39 = vpop.eup %381 }
  0xa3   :  { %v384_v40 = vpop.eup %383  ;;  %v156_v41 = vmul.f32 %v382_v39, %v144_v37  ;;  %vm162_vm2 = vweird.f32 %v382_v39 }
  0xa4   :  { %v146_v42 = vmul.f32 %v384_v40, %v143_v38  ;;  %vm152_vm3 = vweird.f32 %v384_v40  ;;  %vm163_vm5 = vmor %vm161_vm4, %vm162_vm2 }
  0xa5   :  { %v157_v43 = vmul.f32 %v382_v39, %v156_v41  ;;  %vm153_vm7 = vmor %vm151_vm6, %vm152_vm3 }
  0xa6   :  { %v147_v44 = vmul.f32 %v384_v40, %v146_v42 }
  0xa7   :  { %v158_v45 = vmul.f32 0.5, %v157_v43 }
  0xa8   :  { %v148_v46 = vmul.f32 0.5, %v147_v44 }
  0xa9   :  { %v159_v47 = vsub.f32 1.5, %v158_v45  ;;  %v378_v45 = vld [vmem:[%s683_s8] ss:$0 sm:$0xff] }
  0xaa   :  { %v149_v48 = vsub.f32 1.5, %v148_v46 }
  0xab   :  { %v160_v49 = vmul.f32 %v382_v39, %v159_v47 }
  0xac   :  { %v150_v51 = vmul.f32 %v384_v40, %v149_v48 }
  0xad   :  { %v164_v54 = vsel %vm163_vm5, %v382_v39, %v160_v49 }
  0xae   :  { %v154_v55 = vsel %vm153_vm7, %v384_v40, %v150_v51  ;;  %v168_v57 = vmul.f32 %v166_v50, %v164_v54 }
  0xaf   :  { %v167_v58 = vmul.f32 %v165_v53, %v154_v55 }
  0xb0   :  { %v174_v59 = vmul.f32 %v374_v52, %v168_v57 }
  0xb1   :  { %v173_v60 = vmul.f32 %v374_v52, %v167_v58 }
  0xb2   :  { %v180_v61 = vadd.f32 %v375_v56, %v174_v59 }
  0xb3   :  { %v179_v62 = vadd.f32 %v375_v56, %v173_v60 }
  0xb4   :  { %354 = vmatmul.msk.f32.vlgmr.msra.gmra.mxu3 %vm111_vm0, %v180_v61 }
  0xb5   :  { %353 = vmatmul.msk.f32.vlgmr.msra.gmra.mxu0 %vm111_vm0, %v179_v62  ;;  %355 = vmatmul.msk.f32.vlgmr.msra.gmra.mxu1 %vm111_vm0, %v179_v62 }
  0xbd   :  { %356 = vmatmul.msk.f32.gmra.mxu1 %vm111_vm0, %v180_v61 }
 0x132   :  { %v243_v5 = vpop.f32.mrf.mxu1  ;;  %v212_v25 = vpop.f32.mrf.mxu0 }
 0x133   :  { %v244_v6 = vadd.f32 %v377_v2, %v243_v5  ;;  %v213_v30 = vadd.f32 %v376_v22, %v212_v25 }
 0x135   :  { %v357_v8 = vmul.f32 -1.442695, %v244_v6 }
 0x137   :  { %385 = vpow2.f32 %v357_v8  ;;  %v215_v38 = vpop.f32.mrf.mxu3 }
 0x138   :  { %v216_v42 = vadd.f32 %v376_v22, %v215_v38 }
 0x13a   :  { %v246_v9 = vpop.f32.mrf.mxu1 }
 0x13b   :  { %v247_v10 = vadd.f32 %v377_v2, %v246_v9 }
 0x13d   :  { %v386_v11 = vpop.eup %385  ;;  %v358_v12 = vmul.f32 -1.442695, %v247_v10 }
 0x13e   :  { %v255_v13 = vadd.f32 1.0, %v386_v11 }
 0x13f   :  { %387 = vpow2.f32 %v358_v12 }
 0x140   :  { %389 = vrcp.f32 %v255_v13  ;;  %v268_v19 = vand.u32 2147483648, %v255_v13  ;;  %v266_v21 = vand.u32 2147483647, %v255_v13  ;;  %vm262_vm9 = vweird.f32 %v255_v13 }
 0x142   :  { %v269_v26 = vor.u32 1.1754944e-38, %v268_v19  ;;  %vm267_vm11 = vcmp.eq.f32.partialorder %v266_v21, 8.507059e+37 }
 0x145   :  { %v388_v14 = vpop.eup %387 }
 0x146   :  { %v390_v15 = vpop.eup %389  ;;  %v256_v16 = vadd.f32 1.0, %v388_v14 }
 0x147   :  { %v258_v17 = vmul.f32 %v390_v15, %v255_v13  ;;  %vm263_vm8 = vweird.f32 %v390_v15 }
 0x148   :  { %391 = vrcp.f32 %v256_v16  ;;  %vm264_vm10 = vmor %vm262_vm9, %vm263_vm8  ;;  %v283_v33 = vand.u32 2147483648, %v256_v16  ;;  %v281_v35 = vand.u32 2147483647, %v256_v16  ;;  %vm277_vm13 = vweird.f32 %v256_v16 }
 0x149   :  { %v259_v18 = vsub.f32 1.0, %v258_v17 }
 0x14a   :  { %v284_v39 = vor.u32 1.1754944e-38, %v283_v33  ;;  %vm282_vm15 = vcmp.eq.f32.partialorder %v281_v35, 8.507059e+37 }
 0x14b   :  { %v260_v20 = vmul.f32 %v390_v15, %v259_v18 }
 0x14d   :  { %v261_v23 = vadd.f32 %v390_v15, %v260_v20 }
 0x14e   :  { %v392_v24 = vpop.eup %391 }
 0x14f   :  { %v265_v27 = vsel %vm264_vm10, %v390_v15, %v261_v23  ;;  %v273_v28 = vmul.f32 %v392_v24, %v256_v16  ;;  %vm278_vm12 = vweird.f32 %v392_v24 }
 0x150   :  { %v270_v29 = vsel %vm267_vm11, %v269_v26, %v265_v27  ;;  %vm279_vm14 = vmor %vm277_vm13, %vm278_vm12 }
 0x151   :  { %v287_v31 = vmul.f32 %v270_v29, %v244_v6  ;;  %v274_v32 = vsub.f32 1.0, %v273_v28 }
 0x153   :  { %v275_v34 = vmul.f32 %v392_v24, %v274_v32  ;;  %v289_v36 = vmul.f32 %v287_v31, %v213_v30 }
 0x155   :  { %v276_v37 = vadd.f32 %v392_v24, %v275_v34  ;;  %359 = vmatmul.msk.f32.vlgmr.msra.gmra.mxu2 %vm111_vm0, %v289_v36 }
 0x157   :  { %v280_v40 = vsel %vm279_vm14, %v392_v24, %v276_v37 }
 0x158   :  { %v285_v41 = vsel %vm282_vm15, %v284_v39, %v280_v40 }
 0x159   :  { %v288_v43 = vmul.f32 %v285_v41, %v247_v10 }
 0x15b   :  { %v290_v44 = vmul.f32 %v288_v43, %v216_v42 }
 0x15d   :  { %360 = vmatmul.msk.f32.gmra.mxu2 %vm111_vm0, %v290_v44 }
 0x1d8   :  { %v322_v46 = vpop.f32.mrf.mxu2 }
 0x1d9   :  { %v323_v47 = vadd.f32 %v378_v45, %v322_v46 }
 0x1db   :  { %v328_v48 = vadd.f32 %v323_v47, %v633_v1 }
 0x1dd   :  { %330 = vst.msk [vmem:[#allocation11] sm:$0xff] %vm111_vm0, %v328_v48 }
 0x1e0   :  { %v325_v49 = vpop.f32.mrf.mxu2 }
 0x1e1   :  { %v326_v50 = vadd.f32 %v378_v45, %v325_v49 }
 0x1e3   :  { %v329_v51 = vadd.f32 %v326_v50, %v631_v0 }
 0x1e5   :  { %331 = vst.msk [vmem:[#allocation11 + $0x8] sm:$0xff] %vm111_vm0, %v329_v51 }
 0x1e6   :  { %344 = dma.vmem_to_hbm [thread:$0]  %s337_s16, 256, %s339_s19, [#allocation4], %s547_s1, %s547_s1, %s548_s22  }
 0x1e7   :  { %543 = dma.done.wait [#allocation4], 256  }
 0x1e8   :  { %544 = vsyncadd [#allocation4], 4294967040 }
 0x1e9   :  { %349 = vsyncpa [#allocation3], 1 }
 0x1ea   :  { %350 = vsyncpa [#allocation6], 1 }
 0x1eb   :  { %351 = vsyncpa [#allocation9], 1 }
 0x1ec   :  { %352 = vsyncpa [#allocation4], 1 }

</bundles_post_ra>
